<compile_context>
chip_gen: v7x
topology: tpu7x:2x2x1
jax: 0.10.0
libtpu: 0.0.40
codegen_flags: <defaults>
</compile_context>

<pallas_src>
import functools

import jax
import jax.numpy as jnp
from jax.experimental import pallas as pl
from jax.experimental.pallas import tpu as pltpu

LN_EPS = 1e-5  # PyTorch nn.LayerNorm default eps


def _round_up(x, m):
    return ((x + m - 1) // m) * m


def _layernorm(x, gamma, beta, mask, inv_d):
    """Two-pass LayerNorm over a lane-padded tile.

    `x` is exactly 0 in the padded lanes, `mask` is 1 on real lanes / 0 on
    padded lanes, `inv_d` = 1/true_feature_count.  gamma/beta are 0 on padded
    lanes so padded output lanes stay exactly 0 (matches nn.LayerNorm: biased
    variance, eps inside rsqrt).
    """
    mean = jnp.sum(x, axis=-1, keepdims=True) * inv_d
    d = (x - mean) * mask                       # zero the padded lanes
    var = jnp.sum(d * d, axis=-1, keepdims=True) * inv_d
    return d * jax.lax.rsqrt(var + LN_EPS) * gamma + beta


def critic_kernel(xa_ref, wcat_ref, w2_ref, vec_ref, bq_ref, out_ref, *,
                  fc1_dims, fc2_dims, f1p, f2p):
    """One batch-tile of the full critic forward.

    xa_ref  : [TB, Dp]       bf16/f32, [state | action | zero-pad]
    wcat_ref: [Dp, F1p+F2p]  block-diag [[w1, 0], [0, wa]] (zero-padded cols)
    w2_ref  : [F1p, F2p]     zero-padded fc2 weight
    vec_ref : [8, F1p+F2p]   f32 packed rows:
        0: b1 (cols :fc1) ++ ba (cols F1p:F1p+fc2)   fused bias
        1: g1   2: be1      (cols :fc1 of the first F1p lanes)
        3: b2   4: g2   5: be2   6: wq               (cols :fc2 of F2p lanes)
        7: LN masks: ones on real fc1 lanes | ones on real fc2 lanes
    bq_ref  : [1]  f32 scalar in SMEM
    out_ref : [1, TB]  lane-dense q
    """
    xa = xa_ref[...]

    # --- fused fc1 + action_value matmul: one MXU pass, f32 accumulate ---
    hb = jnp.dot(xa, wcat_ref[...], preferred_element_type=jnp.float32)
    hb = hb + vec_ref[0:1, :]                       # fused biases b1 ++ ba

    h_raw = hb[:, :f1p]                             # state branch pre-LN
    av_raw = hb[:, f1p:]                            # action branch pre-relu

    g1, be1 = vec_ref[1:2, :f1p], vec_ref[2:3, :f1p]
    b2 = vec_ref[3:4, :f2p]
    g2, be2 = vec_ref[4:5, :f2p], vec_ref[5:6, :f2p]
    wq = vec_ref[6:7, :f2p]
    mask1 = vec_ref[7:8, :f1p]
    mask2 = vec_ref[7:8, f1p:]

    # state branch: LN -> relu -> fc2 -> LN   (VPU math in f32)
    h = jnp.maximum(_layernorm(h_raw, g1, be1, mask1, 1.0 / fc1_dims), 0.0)
    sv = jnp.dot(h.astype(w2_ref.dtype), w2_ref[...],
                 preferred_element_type=jnp.float32) + b2
    sv = _layernorm(sv, g2, be2, mask2, 1.0 / fc2_dims)

    # action branch: relu
    av = jnp.maximum(av_raw, 0.0)

    # fuse, relu, q head on the VPU/XLU (no N=1 MXU pass)
    sa = jnp.maximum(sv + av, 0.0)
    q = jnp.sum(sa * wq, axis=-1, keepdims=True) + bq_ref[0]   # [TB, 1]
    out_ref[...] = jnp.transpose(q).astype(out_ref.dtype)      # lane-dense [1, TB]


def _choose_batch_tile(batch):
    """Batch-tile (sublane) size.

    <=128 rows: one 8-aligned tile.  Above that: <=512-row tiles but always
    >=2 tiles so the "parallel" batch axis can shard across both TensorCores
    on v7x (on v5e/v6e the extra grid step is ~0.35us of serial loop - noise).
    """
    if batch <= 128:
        return _round_up(batch, 8)
    ntiles = max(2, pl.cdiv(batch, 512))
    return _round_up(pl.cdiv(batch, ntiles), 8)


def critic_forward(state, action, packed):
    """Fused TD3-critic forward.  Returns q of shape [B, 1] (float32)."""
    b = state.shape[0]
    mxu_dtype = packed["wcat"].dtype
    din = packed["input_dims"] + packed["n_actions"]
    din_p, f1p, f2p = packed["din_p"], packed["f1p"], packed["f2p"]
    fcat = f1p + f2p

    tb = _choose_batch_tile(b)
    ntiles = pl.cdiv(b, tb)

    # [state | action | zero-pad] -> [B, Dp] in the MXU dtype (single concat).
    pieces = [state.astype(mxu_dtype), action.astype(mxu_dtype)]
    if din_p > din:
        pieces.append(jnp.zeros((b, din_p - din), mxu_dtype))
    xa = jnp.concatenate(pieces, axis=-1)

    # Only the tiny single-tile case pads rows (cheap).  Multi-tile cases rely
    # on Pallas' ragged last block: garbage rows feed only outputs sliced off
    # below.
    if ntiles == 1 and tb != b:
        xa = jnp.concatenate(
            [xa, jnp.zeros((tb - b, din_p), mxu_dtype)], axis=0)

    kernel = functools.partial(
        critic_kernel,
        fc1_dims=packed["fc1_dims"], fc2_dims=packed["fc2_dims"],
        f1p=f1p, f2p=f2p)

    itemsize = packed["wcat"].dtype.itemsize
    cost = pl.CostEstimate(
        flops=2 * b * (din_p * fcat + f1p * f2p),
        transcendentals=2 * b,
        bytes_accessed=(xa.size * itemsize
                        + packed["wcat"].size * itemsize
                        + packed["w2"].size * itemsize
                        + packed["vecs"].size * 4
                        + ntiles * tb * 4),
    )

    out = pl.pallas_call(
        kernel,
        out_shape=jax.ShapeDtypeStruct((ntiles, tb), jnp.float32),
        grid=(ntiles,),
        in_specs=[
            pl.BlockSpec((tb, din_p), lambda i: (i, 0)),          # xa (batch-tiled)
            pl.BlockSpec((din_p, fcat), lambda i: (0, 0)),        # block-diag [w1|wa]
            pl.BlockSpec((f1p, f2p), lambda i: (0, 0)),           # w2
            pl.BlockSpec((8, fcat), lambda i: (0, 0)),            # packed vectors
            pl.BlockSpec(memory_space=pltpu.MemorySpace.SMEM),    # bq scalar
        ],
        out_specs=pl.BlockSpec((1, tb), lambda i: (i, 0)),        # lane-dense q
        compiler_params=pltpu.CompilerParams(
            dimension_semantics=("parallel",)),
        cost_estimate=cost,
    )(xa, packed["wcat"], packed["w2"], packed["vecs"], packed["bq"])

    return out.reshape(-1)[:b].reshape(b, 1)


def init_params(key, input_dims, fc1_dims, fc2_dims, n_actions):
    """Deterministic synthetic init mirroring the module's __init__ bounds."""
    ks = jax.random.split(key, 8)
    f1 = 1.0 / jnp.sqrt(jnp.float32(fc1_dims))   # fc1.weight.size(0) == fc1_dims
    f2 = 1.0 / jnp.sqrt(jnp.float32(fc2_dims))   # fc2.weight.size(0) == fc2_dims
    fa = 1.0 / jnp.sqrt(jnp.float32(n_actions))  # PyTorch default for action_value
    f3 = 0.003

    def u(k, shape, bound):
        return jax.random.uniform(k, shape, jnp.float32, -bound, bound)

    return {
        "w1": u(ks[0], (input_dims, fc1_dims), f1),
        "b1": u(ks[1], (1, fc1_dims), f1),
        "g1": jnp.ones((1, fc1_dims), jnp.float32),
        "be1": jnp.zeros((1, fc1_dims), jnp.float32),
        "w2": u(ks[2], (fc1_dims, fc2_dims), f2),
        "b2": u(ks[3], (1, fc2_dims), f2),
        "g2": jnp.ones((1, fc2_dims), jnp.float32),
        "be2": jnp.zeros((1, fc2_dims), jnp.float32),
        "wa": u(ks[4], (n_actions, fc2_dims), fa),
        "ba": u(ks[5], (1, fc2_dims), fa),
        "wq": u(ks[6], (fc2_dims, 1), f3),
        "bq": u(ks[7], (1, 1), f3),
    }


def pack_params(p, input_dims, fc1_dims, fc2_dims, n_actions,
                mxu_dtype=jnp.bfloat16):
    """Build the fused / lane-aligned parameter buffers once (outside kernel).

    F1/F2 are padded to multiples of 128 (padded weight/bias/gamma/beta/wq
    columns are exactly zero); the MXU operands are stored in `mxu_dtype`.
    """
    f1p = _round_up(fc1_dims, 128)
    f2p = _round_up(fc2_dims, 128)
    fcat = f1p + f2p
    din = input_dims + n_actions
    din_p = _round_up(din, 8)

    # block-diagonal weight for the fused fc1 + action_value matmul
    wcat = jnp.zeros((din_p, fcat), jnp.float32)
    wcat = wcat.at[:input_dims, :fc1_dims].set(p["w1"])
    wcat = wcat.at[input_dims:din, f1p:f1p + fc2_dims].set(p["wa"])

    w2 = jnp.zeros((f1p, f2p), jnp.float32)
    w2 = w2.at[:fc1_dims, :fc2_dims].set(p["w2"])

    vecs = jnp.zeros((8, fcat), jnp.float32)
    vecs = vecs.at[0, :fc1_dims].set(p["b1"][0])
    vecs = vecs.at[0, f1p:f1p + fc2_dims].set(p["ba"][0])
    vecs = vecs.at[1, :fc1_dims].set(p["g1"][0])
    vecs = vecs.at[2, :fc1_dims].set(p["be1"][0])
    vecs = vecs.at[3, :fc2_dims].set(p["b2"][0])
    vecs = vecs.at[4, :fc2_dims].set(p["g2"][0])
    vecs = vecs.at[5, :fc2_dims].set(p["be2"][0])
    vecs = vecs.at[6, :fc2_dims].set(p["wq"][:, 0])
    vecs = vecs.at[7, :fc1_dims].set(1.0)                 # LN1 lane mask
    vecs = vecs.at[7, f1p:f1p + fc2_dims].set(1.0)        # LN2 lane mask

    return {
        "wcat": wcat.astype(mxu_dtype),
        "w2": w2.astype(mxu_dtype),
        "vecs": vecs,                       # stays f32 (VPU math)
        "bq": p["bq"].reshape(-1),          # (1,) f32 scalar -> SMEM
        "input_dims": input_dims, "n_actions": n_actions,
        "fc1_dims": fc1_dims, "fc2_dims": fc2_dims,
        "din_p": din_p, "f1p": f1p, "f2p": f2p,
    }


def reference_forward(state, action, p, mxu_dtype=jnp.float32):
    """Pure-JAX reference of the PyTorch forward (optionally bf16 MXU ops)."""
    def ln(x, g, b):
        mean = jnp.mean(x, axis=-1, keepdims=True)
        var = jnp.mean((x - mean) ** 2, axis=-1, keepdims=True)
        return (x - mean) * jax.lax.rsqrt(var + LN_EPS) * g + b

    def mm(x, w):
        return jnp.dot(x.astype(mxu_dtype), w.astype(mxu_dtype),
                       preferred_element_type=jnp.float32)

    h = mm(state, p["w1"]) + p["b1"]
    h = jnp.maximum(ln(h, p["g1"], p["be1"]), 0.0)
    sv = ln(mm(h, p["w2"]) + p["b2"], p["g2"], p["be2"])
    av = jnp.maximum(mm(action, p["wa"]) + p["ba"], 0.0)
    sa = jnp.maximum(sv + av, 0.0)
    return sa @ p["wq"] + p["bq"]


if __name__ == "__main__":
    # Small shapes consistent with the module's forward.
    B, INPUT_DIMS, FC1, FC2, N_ACTIONS = 8, 16, 32, 32, 4

    key = jax.random.PRNGKey(0)
    k_params, k_state, k_action = jax.random.split(key, 3)

    params = init_params(k_params, INPUT_DIMS, FC1, FC2, N_ACTIONS)
    state = jax.random.normal(k_state, (B, INPUT_DIMS), jnp.float32)
    action = jax.random.normal(k_action, (B, N_ACTIONS), jnp.float32)

    # 1) exactness check: f32 MXU operands vs. the pure-JAX reference
    packed_f32 = pack_params(params, INPUT_DIMS, FC1, FC2, N_ACTIONS,
                             mxu_dtype=jnp.float32)
    q_f32 = jax.block_until_ready(critic_forward(state, action, packed_f32))
    q_ref = reference_forward(state, action, params)
    assert q_f32.shape == (B, 1)
    assert jnp.allclose(q_f32, q_ref, atol=1e-4, rtol=1e-4), (q_f32, q_ref)

    # 2) perf path: bf16 MXU operands (f32 accumulate, f32 VPU/EUP math)
    packed_bf16 = pack_params(params, INPUT_DIMS, FC1, FC2, N_ACTIONS,
                              mxu_dtype=jnp.bfloat16)
    q_bf16 = jax.block_until_ready(critic_forward(state, action, packed_bf16))
    q_ref_bf16 = reference_forward(state, action, params,
                                   mxu_dtype=jnp.bfloat16)
    assert q_bf16.shape == (B, 1)
    assert jnp.allclose(q_bf16, q_ref_bf16, atol=5e-3, rtol=5e-2), \
        (q_bf16, q_ref_bf16)

    print("KERNEL_OK")
</pallas_src>

<mosaic_0001>
module attributes {stable_mosaic.version = 11 : i64} {
  func.func @critic_kernel(%arg0: i32, %arg1: memref<8x24xf32, #tpu.memory_space<vmem>>, %arg2: memref<24x256xf32, #tpu.memory_space<vmem>>, %arg3: memref<128x128xf32, #tpu.memory_space<vmem>>, %arg4: memref<8x256xf32, #tpu.memory_space<vmem>>, %arg5: memref<1xf32, #tpu.memory_space<smem>>, %arg6: memref<1x8xf32, #tpu.memory_space<vmem>>) attributes {dimension_semantics = [#tpu.dimension_semantics<parallel>], iteration_bounds = array<i64: 1>, scalar_prefetch = 0 : i64, scratch_operands = 0 : i64, tpu.core_type = #tpu.core_type<tc>, window_params = [{transform_indices = @transform_0, window_bounds = array<i64: 8, 24>}, {pipeline_mode = #tpu.pipeline_mode<synchronous>, transform_indices = @transform_1, window_bounds = array<i64: 24, 256>}, {pipeline_mode = #tpu.pipeline_mode<synchronous>, transform_indices = @transform_2, window_bounds = array<i64: 128, 128>}, {pipeline_mode = #tpu.pipeline_mode<synchronous>, transform_indices = @transform_3, window_bounds = array<i64: 8, 256>}, {transform_indices = @transform_4, window_bounds = array<i64: 1>}, {transform_indices = @transform_5, window_bounds = array<i64: 1, 8>}]} {
    %c0 = arith.constant 0 : index
    %c0_0 = arith.constant 0 : index
    %0 = vector.load %arg1[%c0, %c0_0] : memref<8x24xf32, #tpu.memory_space<vmem>>, vector<8x24xf32>
    %c0_1 = arith.constant 0 : index
    %c0_2 = arith.constant 0 : index
    %1 = vector.load %arg2[%c0_1, %c0_2] : memref<24x256xf32, #tpu.memory_space<vmem>>, vector<24x256xf32>
    %cst = arith.constant dense<0.000000e+00> : vector<8x256xf32>
    %2 = tpu.matmul %0, %1, %cst {dimension_numbers = #tpu.dot_dimension_numbers<[1], [0], [0], [1], [0, 0, 1, 1], [], []>} : vector<8x24xf32>, vector<24x256xf32>, vector<8x256xf32> -> vector<8x256xf32>
    %c0_3 = arith.constant 0 : index
    %c0_4 = arith.constant 0 : index
    %3 = vector.load %arg4[%c0_3, %c0_4] : memref<8x256xf32, #tpu.memory_space<vmem>>, vector<1x256xf32>
    %4 = vector.broadcast %3 : vector<1x256xf32> to vector<8x256xf32>
    %5 = arith.addf %2, %4 : vector<8x256xf32>
    %6 = vector.extract_strided_slice %5 {offsets = [0, 0], sizes = [8, 128], strides = [1, 1]} : vector<8x256xf32> to vector<8x128xf32>
    %7 = vector.extract_strided_slice %5 {offsets = [0, 128], sizes = [8, 128], strides = [1, 1]} : vector<8x256xf32> to vector<8x128xf32>
    %c1 = arith.constant 1 : index
    %c0_5 = arith.constant 0 : index
    %8 = vector.load %arg4[%c1, %c0_5] : memref<8x256xf32, #tpu.memory_space<vmem>>, vector<1x128xf32>
    %c2 = arith.constant 2 : index
    %c0_6 = arith.constant 0 : index
    %9 = vector.load %arg4[%c2, %c0_6] : memref<8x256xf32, #tpu.memory_space<vmem>>, vector<1x128xf32>
    %c3 = arith.constant 3 : index
    %c0_7 = arith.constant 0 : index
    %10 = vector.load %arg4[%c3, %c0_7] : memref<8x256xf32, #tpu.memory_space<vmem>>, vector<1x128xf32>
    %c4 = arith.constant 4 : index
    %c0_8 = arith.constant 0 : index
    %11 = vector.load %arg4[%c4, %c0_8] : memref<8x256xf32, #tpu.memory_space<vmem>>, vector<1x128xf32>
    %c5 = arith.constant 5 : index
    %c0_9 = arith.constant 0 : index
    %12 = vector.load %arg4[%c5, %c0_9] : memref<8x256xf32, #tpu.memory_space<vmem>>, vector<1x128xf32>
    %c6 = arith.constant 6 : index
    %c0_10 = arith.constant 0 : index
    %13 = vector.load %arg4[%c6, %c0_10] : memref<8x256xf32, #tpu.memory_space<vmem>>, vector<1x128xf32>
    %c7 = arith.constant 7 : index
    %c0_11 = arith.constant 0 : index
    %14 = vector.load %arg4[%c7, %c0_11] : memref<8x256xf32, #tpu.memory_space<vmem>>, vector<1x128xf32>
    %c7_12 = arith.constant 7 : index
    %c128 = arith.constant 128 : index
    %15 = vector.load %arg4[%c7_12, %c128] : memref<8x256xf32, #tpu.memory_space<vmem>>, vector<1x128xf32>
    %cst_13 = arith.constant dense<0.000000e+00> : vector<8xf32>
    %16 = vector.multi_reduction <add>, %6, %cst_13 [1] : vector<8x128xf32> to vector<8xf32>
    %17 = vector.shape_cast %16 : vector<8xf32> to vector<8x1xf32>
    %cst_14 = arith.constant 3.125000e-02 : f32
    %18 = vector.broadcast %cst_14 : f32 to vector<8x1xf32>
    %19 = arith.mulf %17, %18 : vector<8x1xf32>
    %20 = vector.broadcast %19 : vector<8x1xf32> to vector<8x128xf32>
    %21 = arith.subf %6, %20 : vector<8x128xf32>
    %22 = vector.broadcast %14 : vector<1x128xf32> to vector<8x128xf32>
    %23 = arith.mulf %21, %22 : vector<8x128xf32>
    %24 = arith.mulf %23, %23 : vector<8x128xf32>
    %cst_15 = arith.constant dense<0.000000e+00> : vector<8xf32>
    %25 = vector.multi_reduction <add>, %24, %cst_15 [1] : vector<8x128xf32> to vector<8xf32>
    %26 = vector.shape_cast %25 : vector<8xf32> to vector<8x1xf32>
    %cst_16 = arith.constant 3.125000e-02 : f32
    %27 = vector.broadcast %cst_16 : f32 to vector<8x1xf32>
    %28 = arith.mulf %26, %27 : vector<8x1xf32>
    %cst_17 = arith.constant 9.99999974E-6 : f32
    %29 = vector.broadcast %cst_17 : f32 to vector<8x1xf32>
    %30 = arith.addf %28, %29 : vector<8x1xf32>
    %31 = math.rsqrt %30 : vector<8x1xf32>
    %32 = vector.broadcast %31 : vector<8x1xf32> to vector<8x128xf32>
    %33 = arith.mulf %23, %32 : vector<8x128xf32>
    %34 = vector.broadcast %8 : vector<1x128xf32> to vector<8x128xf32>
    %35 = arith.mulf %33, %34 : vector<8x128xf32>
    %36 = vector.broadcast %9 : vector<1x128xf32> to vector<8x128xf32>
    %37 = arith.addf %35, %36 : vector<8x128xf32>
    %cst_18 = arith.constant 0.000000e+00 : f32
    %38 = vector.broadcast %cst_18 : f32 to vector<8x128xf32>
    %39 = arith.maximumf %37, %38 : vector<8x128xf32>
    %c0_19 = arith.constant 0 : index
    %c0_20 = arith.constant 0 : index
    %40 = vector.load %arg3[%c0_19, %c0_20] : memref<128x128xf32, #tpu.memory_space<vmem>>, vector<128x128xf32>
    %cst_21 = arith.constant dense<0.000000e+00> : vector<8x128xf32>
    %41 = tpu.matmul %39, %40, %cst_21 {dimension_numbers = #tpu.dot_dimension_numbers<[1], [0], [0], [1], [0, 0, 1, 1], [], []>} : vector<8x128xf32>, vector<128x128xf32>, vector<8x128xf32> -> vector<8x128xf32>
    %42 = vector.broadcast %10 : vector<1x128xf32> to vector<8x128xf32>
    %43 = arith.addf %41, %42 : vector<8x128xf32>
    %cst_22 = arith.constant dense<0.000000e+00> : vector<8xf32>
    %44 = vector.multi_reduction <add>, %43, %cst_22 [1] : vector<8x128xf32> to vector<8xf32>
    %45 = vector.shape_cast %44 : vector<8xf32> to vector<8x1xf32>
    %cst_23 = arith.constant 3.125000e-02 : f32
    %46 = vector.broadcast %cst_23 : f32 to vector<8x1xf32>
    %47 = arith.mulf %45, %46 : vector<8x1xf32>
    %48 = vector.broadcast %47 : vector<8x1xf32> to vector<8x128xf32>
    %49 = arith.subf %43, %48 : vector<8x128xf32>
    %50 = vector.broadcast %15 : vector<1x128xf32> to vector<8x128xf32>
    %51 = arith.mulf %49, %50 : vector<8x128xf32>
    %52 = arith.mulf %51, %51 : vector<8x128xf32>
    %cst_24 = arith.constant dense<0.000000e+00> : vector<8xf32>
    %53 = vector.multi_reduction <add>, %52, %cst_24 [1] : vector<8x128xf32> to vector<8xf32>
    %54 = vector.shape_cast %53 : vector<8xf32> to vector<8x1xf32>
    %cst_25 = arith.constant 3.125000e-02 : f32
    %55 = vector.broadcast %cst_25 : f32 to vector<8x1xf32>
    %56 = arith.mulf %54, %55 : vector<8x1xf32>
    %cst_26 = arith.constant 9.99999974E-6 : f32
    %57 = vector.broadcast %cst_26 : f32 to vector<8x1xf32>
    %58 = arith.addf %56, %57 : vector<8x1xf32>
    %59 = math.rsqrt %58 : vector<8x1xf32>
    %60 = vector.broadcast %59 : vector<8x1xf32> to vector<8x128xf32>
    %61 = arith.mulf %51, %60 : vector<8x128xf32>
    %62 = vector.broadcast %11 : vector<1x128xf32> to vector<8x128xf32>
    %63 = arith.mulf %61, %62 : vector<8x128xf32>
    %64 = vector.broadcast %12 : vector<1x128xf32> to vector<8x128xf32>
    %65 = arith.addf %63, %64 : vector<8x128xf32>
    %cst_27 = arith.constant 0.000000e+00 : f32
    %66 = vector.broadcast %cst_27 : f32 to vector<8x128xf32>
    %67 = arith.maximumf %7, %66 : vector<8x128xf32>
    %68 = arith.addf %65, %67 : vector<8x128xf32>
    %cst_28 = arith.constant 0.000000e+00 : f32
    %69 = vector.broadcast %cst_28 : f32 to vector<8x128xf32>
    %70 = arith.maximumf %68, %69 : vector<8x128xf32>
    %71 = vector.broadcast %13 : vector<1x128xf32> to vector<8x128xf32>
    %72 = arith.mulf %70, %71 : vector<8x128xf32>
    %cst_29 = arith.constant dense<0.000000e+00> : vector<8xf32>
    %73 = vector.multi_reduction <add>, %72, %cst_29 [1] : vector<8x128xf32> to vector<8xf32>
    %74 = vector.shape_cast %73 : vector<8xf32> to vector<8x1xf32>
    %c0_30 = arith.constant 0 : index
    %75 = memref.load %arg5[%c0_30] : memref<1xf32, #tpu.memory_space<smem>>
    %76 = vector.broadcast %75 : f32 to vector<8x1xf32>
    %77 = arith.addf %74, %76 : vector<8x1xf32>
    %78 = tpu.transpose %77, [1, 0] : vector<8x1xf32> -> vector<1x8xf32>
    %c0_31 = arith.constant 0 : index
    %c0_32 = arith.constant 0 : index
    %79 = vector.load %arg6[%c0_31, %c0_32] : memref<1x8xf32, #tpu.memory_space<vmem>>, vector<1x8xf32>
    tpu.vector_store %arg6[%c0_31, %c0_32], %78 {strides = array<i32>} : memref<1x8xf32, #tpu.memory_space<vmem>>, vector<1x8xf32>,
    return
  }
  func.func @transform_0(%arg0: i32) -> (i32, i32) {
    %c0_i32 = arith.constant 0 : i32
    %c0_i32_0 = arith.constant 0 : i32
    return %arg0, %c0_i32 : i32, i32
  }
  func.func @transform_1(%arg0: i32) -> (i32, i32) {
    %c0_i32 = arith.constant 0 : i32
    %c0_i32_0 = arith.constant 0 : i32
    %c0_i32_1 = arith.constant 0 : i32
    return %c0_i32, %c0_i32_0 : i32, i32
  }
  func.func @transform_2(%arg0: i32) -> (i32, i32) {
    %c0_i32 = arith.constant 0 : i32
    %c0_i32_0 = arith.constant 0 : i32
    %c0_i32_1 = arith.constant 0 : i32
    return %c0_i32, %c0_i32_0 : i32, i32
  }
  func.func @transform_3(%arg0: i32) -> (i32, i32) {
    %c0_i32 = arith.constant 0 : i32
    %c0_i32_0 = arith.constant 0 : i32
    %c0_i32_1 = arith.constant 0 : i32
    return %c0_i32, %c0_i32_0 : i32, i32
  }
  func.func @transform_4(%arg0: i32) -> i32 {
    %c0_i32 = arith.constant 0 : i32
    %c0_i32_0 = arith.constant 0 : i32
    return %c0_i32 : i32
  }
  func.func @transform_5(%arg0: i32) -> (i32, i32) {
    %c0_i32 = arith.constant 0 : i32
    %c0_i32_0 = arith.constant 0 : i32
    return %arg0, %c0_i32 : i32, i32
  }
}

</mosaic_0001>

<bundles_post_ra>
// kernel: tpu_custom_call.1
= control target key start
LH: loop header
LB: loop body
LE: loop exit
PB: predicated region body
PF: predicated region fallthrough
CT: control target
= control target key end

     0   :  { %11 = vsyncpa [#allocation4], 0  ;;  %s681_s0 = inlined_call_operand.hbm [shape: f32[8,24], index: 0, kind: input, shape index: {}]   ;;  %s682_s1 = inlined_call_operand.hbm [shape: f32[24,256], index: 1, kind: input, shape index: {}]   ;;  %s683_s2 = inlined_call_operand.hbm [shape: f32[128,128], index: 2, kind: input, shape index: {}]   ;;  %s684_s3 = inlined_call_operand.hbm [shape: f32[8,256], index: 3, kind: input, shape index: {}]   ;;  %s685_s4 = inlined_call_operand.<no memory space> [shape: f32[1], index: 4, kind: input, shape index: {}]   ;;  %s686_s5 = inlined_call_operand.hbm [shape: f32[1,8], index: 5, kind: output, shape index: {}]  }
   0x1   :  { %12 = vsyncpa [#allocation7], 0 }
   0x2   :  { %13 = vsyncpa [#allocation10], 0 }
   0x3   :  { %14 = vsyncpa [#allocation5], 0  ;;  %s565_s18 = smov [#allocation6]   ;;  %s447_s22 = scalar_lea.hbm %s682_s1, 768 }
   0x4   :  { %s30_s19 = sshll.u32 %s565_s18, 4  ;;  %p448_p0 = scmp.ne.s32.totalorder %s682_s1, %s447_s22  ;;  %s31_s19 = int_to_ptr.vmem [resolvable:$true] %s30_s19 }
   0x5   :  { %p451_p1 = scmp.lt.u32.totalorder %s447_s22, %s682_s1 }
   0x7   :  { %p453_p2 = pnand %p451_p1, %p448_p0 }
   0x9   :  { %456 = shalt.err (!%p453_p2)
}
   0xa   :  { %s457_s27 = scalar_lea.vmem %s31_s19, 768  ;;  %p462_p4 = scmp.lt.s32.totalorder %s31_s19, %s31_s19 }
   0xb   :  { %p458_p3 = scmp.ne.s32.totalorder %s31_s19, %s457_s27  ;;  %p463_p5 = scmp.lt.s32.totalorder %s457_s27, %s457_s27 }
   0xd   :  { %p464_p6 = por %p463_p5, %p462_p4 }
   0xf   :  { %p465_p7 = pnand %p464_p6, %p458_p3 }
  0x11   :  { %468 = shalt.err (!%p465_p7)
}
  0x12   :  { %s566_s28 = smov 256   ;;  %s567_s29 = smov 16  }
  0x13   :  { %36 = dma.hbm_to_vmem [thread:$0]  %s682_s1, 768, %s31_s19, [#allocation7], %s566_s28, %s566_s28, %s567_s29  }
  0x14   :  { %s568_s7 = smov [#allocation3]   ;;  %s569_s9 = smov [#allocation8]  }
  0x15   :  { %s21_s8 = sshll.u32 %s568_s7, 4  ;;  %s42_s10 = sshll.u32 %s569_s9, 4  ;;  %s22_s8 = int_to_ptr.vmem [resolvable:$true] %s21_s8  ;;  %s43_s10 = int_to_ptr.vmem [resolvable:$true] %s42_s10 }
  0x16   :  { %s469_s13 = scalar_lea.hbm %s681_s0, 128 }
  0x17   :  { %p470_p8 = scmp.ne.s32.totalorder %s681_s0, %s469_s13  ;;  %p473_p9 = scmp.lt.u32.totalorder %s469_s13, %s681_s0 }
  0x19   :  { %p475_p10 = pnand %p473_p9, %p470_p8 }
  0x1b   :  { %478 = shalt.err (!%p475_p10)
}
  0x1c   :  { %s479_s1 = scalar_lea.vmem %s22_s8, 128  ;;  %p484_p12 = scmp.lt.s32.totalorder %s22_s8, %s22_s8 }
  0x1d   :  { %p480_p11 = scmp.ne.s32.totalorder %s22_s8, %s479_s1  ;;  %p485_p13 = scmp.lt.s32.totalorder %s479_s1, %s479_s1 }
  0x1f   :  { %p486_p0 = por %p485_p13, %p484_p12 }
  0x21   :  { %p487_p1 = pnand %p486_p0, %p480_p11 }
  0x23   :  { %490 = shalt.err (!%p487_p1)
}
  0x24   :  { %24 = dma.hbm_to_vmem [thread:$0]  %s681_s0, 128, %s22_s8, [#allocation4]  }
  0x25   :  { %s491_s22 = scalar_lea.hbm %s683_s2, 2048 }
  0x26   :  { %p492_p2 = scmp.ne.s32.totalorder %s683_s2, %s491_s22  ;;  %p495_p3 = scmp.lt.u32.totalorder %s491_s22, %s683_s2 }
  0x28   :  { %p497_p4 = pnand %p495_p3, %p492_p2 }
  0x2a   :  { %500 = shalt.err (!%p497_p4)
}
  0x2b   :  { %s501_s27 = scalar_lea.vmem %s43_s10, 2048  ;;  %p506_p6 = scmp.lt.s32.totalorder %s43_s10, %s43_s10 }
  0x2c   :  { %p502_p5 = scmp.ne.s32.totalorder %s43_s10, %s501_s27  ;;  %p507_p7 = scmp.lt.s32.totalorder %s501_s27, %s501_s27 }
  0x2e   :  { %p508_p8 = por %p507_p7, %p506_p6 }
  0x30   :  { %p509_p9 = pnand %p508_p8, %p502_p5 }
  0x32   :  { %512 = shalt.err (!%p509_p9)
}
  0x33   :  { %s570_s0 = smov 128   ;;  %s571_s28 = smov 8  }
  0x34   :  { %48 = dma.hbm_to_vmem [thread:$0]  %s683_s2, 2048, %s43_s10, [#allocation7], %s570_s0, %s570_s0, %s571_s28  }
  0x35   :  { %s572_s6 = smov [#allocation9]   ;;  %s513_s11 = scalar_lea.hbm %s684_s3, 256 }
  0x36   :  { %s55_s7 = sshll.u32 %s572_s6, 4  ;;  %p514_p10 = scmp.ne.s32.totalorder %s684_s3, %s513_s11  ;;  %s56_s7 = int_to_ptr.vmem [resolvable:$true] %s55_s7 }
  0x37   :  { %p517_p11 = scmp.lt.u32.totalorder %s513_s11, %s684_s3 }
  0x39   :  { %p519_p12 = pnand %p517_p11, %p514_p10 }
  0x3b   :  { %522 = shalt.err (!%p519_p12)
}
  0x3c   :  { %s523_s16 = scalar_lea.vmem %s56_s7, 256  ;;  %p528_p0 = scmp.lt.s32.totalorder %s56_s7, %s56_s7 }
  0x3d   :  { %p524_p13 = scmp.ne.s32.totalorder %s56_s7, %s523_s16  ;;  %p529_p1 = scmp.lt.s32.totalorder %s523_s16, %s523_s16 }
  0x3f   :  { %p530_p2 = por %p529_p1, %p528_p0 }
  0x41   :  { %p531_p3 = pnand %p530_p2, %p524_p13 }
  0x43   :  { %534 = shalt.err (!%p531_p3)
}
  0x44   :  { %58 = dma.hbm_to_vmem [thread:$0]  %s684_s3, 256, %s56_s7, [#allocation10]  }
  0x45   :  { %557 = dma.done.wait [#allocation4], 128  }
  0x46   :  { %558 = vsyncadd [#allocation4], 4294967168 }
  0x47   :  { %559 = dma.done.wait [#allocation7], 2816  }
  0x48   :  { %560 = vsyncadd [#allocation7], 4294964480 }
  0x49   :  { %561 = dma.done.wait [#allocation10], 256  }
  0x4a   :  { %562 = vsyncadd [#allocation10], 4294967040  ;;  %v573_v0 = vmov 0.0   ;;  %v75_v1 = vld [vmem:[#allocation6 + $0x8] sm:$0xff]  ;;  %v77_v2 = vld [vmem:[#allocation6 + $0x18] sm:$0xff]  ;;  %vm92_vm0 = vcmask 195584   ;;  %v82_v10 = vlaneseq }
  0x4b   :  { %160 = vmatprep.mubr.f32.mxu0 %v573_v0  ;;  %v74_v3 = vld [vmem:[#allocation6] sm:$0xff]  ;;  %v403_v4 = vpack.c.bf16 %v77_v2, %v75_v1  ;;  %v76_v5 = vld [vmem:[#allocation6 + $0x10] sm:$0xff]  ;;  %v79_v7 = vld [vmem:[#allocation6 + $0x28] sm:$0xff]  ;;  %v574_v21 = vmov 0.0|0.0   ;;  %vm575_vm1 = vmmov 0   ;;  %s576_s1 = smov [#allocation11]  }
  0x4c   :  { %v405_v6 = vpack.c.bf16 %v76_v5, %v74_v3  ;;  %v78_v8 = vld [vmem:[#allocation6 + $0x20] sm:$0xff]  ;;  %v73_v9 = vld [vmem:[#allocation3] sm:$0xff]  ;;  %v655_v11 = vshrl.u32 %v82_v10, 7  ;;  %v190_v18 = vld [vmem:[#allocation8] sm:$0xff]  ;;  %407 = vmatprep.subr.bf16.mxu1 %v574_v21  ;;  %400 = vmatprep.mubr.msk.f32.mxu1 %vm575_vm1, %v573_v0  ;;  %s339_s18 = sshll.u32 %s576_s1, 4  ;;  %vm331_vm2 = vcmask 57344   ;;  %s340_s18 = int_to_ptr.vmem [resolvable:$true] %s339_s18 }
  0x4d   :  { %404 = vmatprep.subr.bf16.mxu0 %v403_v4  ;;  %v658_v13 = vld [vmem:[#allocation9] ss:$8 sm:$0x3]  ;;  %v192_v20 = vld [vmem:[#allocation8 + $0x10] sm:$0xff]  ;;  %v193_v23 = vld [vmem:[#allocation8 + $0x18] sm:$0xff]  ;;  %s535_s19 = scalar_lea.vmem %s340_s18, 16  ;;  %p540_p5 = scmp.lt.s32.totalorder %s340_s18, %s340_s18 }
  0x4e   :  { %406 = vmatpush1.bf16.msra.mxu0 %v405_v6  ;;  %v84_v12 = vsub.s32 0, %v655_v11  ;;  %v191_v19 = vld [vmem:[#allocation8 + $0x8] sm:$0xff]  ;;  %v411_v24 = vpack.c.bf16 %v193_v23, %v192_v20  ;;  %v173_v27 = vld [vmem:[#allocation9 + $0x7] ss:$0 sm:$0xff]  ;;  %v196_v34 = vld [vmem:[#allocation8 + $0x30] sm:$0xff]  ;;  %p536_p4 = scmp.ne.s32.totalorder %s340_s18, %s535_s19  ;;  %s539_s20 = scalar_lea.vmem %s340_s18, 32 }
  0x4f   :  { %100 = vmatprep.subr.mxu0 %v79_v7  ;;  %v408_v22 = vpack.c.bf16 %v191_v19, %v190_v18  ;;  %v194_v31 = vld [vmem:[#allocation8 + $0x20] sm:$0xff]  ;;  %v195_v32 = vld [vmem:[#allocation8 + $0x28] sm:$0xff]  ;;  %v197_v35 = vld [vmem:[#allocation8 + $0x38] sm:$0xff]  ;;  %p541_p6 = scmp.lt.s32.totalorder %s539_s20, %s535_s19 }
  0x50   :  { %v85_v14 = vrot.slane %v658_v13, %v84_v12  ;;  %v414_v33 = vpack.c.bf16 %v195_v32, %v194_v31  ;;  %v417_v36 = vpack.c.bf16 %v197_v35, %v196_v34  ;;  %v198_v37 = vld [vmem:[#allocation8 + $0x40] sm:$0xff]  ;;  %v199_v38 = vld [vmem:[#allocation8 + $0x48] sm:$0xff]  ;;  %v200_v40 = vld [vmem:[#allocation8 + $0x50] sm:$0xff] }
  0x51   :  { %409 = vmatpush3.bf16.msra.mxu1 %v408_v22  ;;  %v420_v39 = vpack.c.bf16 %v199_v38, %v198_v37  ;;  %v201_v41 = vld [vmem:[#allocation8 + $0x58] sm:$0xff]  ;;  %v202_v43 = vld [vmem:[#allocation8 + $0x60] sm:$0xff]  ;;  %v203_v44 = vld [vmem:[#allocation8 + $0x68] sm:$0xff]  ;;  %p542_p7 = por %p541_p6, %p540_p5 }
  0x52   :  { %101 = vmatpush1.msra.mxu0 %v78_v8  ;;  %410 = vmatprep.subr.bf16.mxu1 %v574_v21  ;;  %v423_v42 = vpack.c.bf16 %v201_v41, %v200_v40  ;;  %v426_v45 = vpack.c.bf16 %v203_v44, %v202_v43  ;;  %v204_v46 = vld [vmem:[#allocation8 + $0x70] sm:$0xff]  ;;  %v205_v47 = vld [vmem:[#allocation8 + $0x78] sm:$0xff]  ;;  %v167_v53 = vld [vmem:[#allocation9 + $0x1] ss:$0 sm:$0xff]  ;;  %v88_v8 = vsub.s32 1, %v655_v11  ;;  %v297_v11 = vstv %s685_s4 }
  0x53   :  { %350 = vmatmul.mubr.msk.f32.vlgmr.msra.gmra.mrb[0].mxu0 %vm92_vm0, %v73_v9  ;;  %v429_v48 = vpack.c.bf16 %v205_v47, %v204_v46  ;;  %v168_v55 = vld [vmem:[#allocation9 + $0x2] ss:$0 sm:$0xff]  ;;  %v169_v59 = vld [vmem:[#allocation9 + $0x3] ss:$0 sm:$0xff]  ;;  %v174_v1 = vld [vmem:[#allocation9 + $0xf] ss:$0 sm:$0xff]  ;;  %p543_p8 = pnand %p542_p7, %p536_p4 }
  0x54   :  { %v89_v9 = vrot.slane %v658_v13, %v88_v8  ;;  %v170_v12 = vld [vmem:[#allocation9 + $0x4] ss:$0 sm:$0xff]  ;;  %v172_v22 = vld [vmem:[#allocation9 + $0x6] ss:$0 sm:$0xff] }
  0x55   :  { %412 = vmatpush3.bf16.msra.mxu1 %v411_v24 }
  0x56   :  { %413 = vmatprep.subr.bf16.mxu1 %v574_v21 }
  0x59   :  { %415 = vmatpush3.bf16.msra.mxu1 %v414_v33 }
  0x5a   :  { %416 = vmatprep.subr.bf16.mxu1 %v574_v21 }
  0x5d   :  { %418 = vmatpush3.bf16.msra.mxu1 %v417_v36 }
  0x5e   :  { %419 = vmatprep.subr.bf16.mxu1 %v574_v21 }
  0x61   :  { %421 = vmatpush3.bf16.msra.mxu1 %v420_v39 }
  0x62   :  { %422 = vmatprep.subr.bf16.mxu1 %v574_v21 }
  0x65   :  { %424 = vmatpush3.bf16.msra.mxu1 %v423_v42 }
  0x66   :  { %425 = vmatprep.subr.bf16.mxu1 %v574_v21 }
  0x69   :  { %427 = vmatpush3.bf16.msra.mxu1 %v426_v45 }
  0x6a   :  { %428 = vmatprep.subr.bf16.mxu1 %v574_v21 }
  0x6d   :  { %430 = vmatpush3.bf16.msra.mxu1 %v429_v48 }
 0x126   :  { %v162_v15 = vpop.f32.mrb[0].mxu0 }
 0x127   :  { %v163_v16 = vadd.f32 %v162_v15, %v85_v14  ;;  %v661_v17 = vpop.f32.mrb[1].mxu0 }
 0x128   :  { %v165_v14 = vadd.f32 %v661_v17, %v89_v9 }
 0x129   :  { %175 = vadd.xlane.f32.xlu0 %v163_v16 }
 0x12a   :  { %v290_v19 = vmax.f32 %v165_v14, 0.0 }
 0x1b6   :  { %v176_v25 = vpop.xlane.xlu0 %175 }
 0x1b7   :  { %v177_v26 = vmul.f32 0.03125, %v176_v25 }
 0x1b9   :  { %v178_v28 = vsub.f32 %v163_v16, %v177_v26  ;;  %v171_v16 = vld [vmem:[#allocation9 + $0x5] ss:$0 sm:$0xff] }
 0x1bb   :  { %v179_v29 = vmul.f32 %v178_v28, %v173_v27 }
 0x1bd   :  { %v180_v30 = vmul.f32 %v179_v29, %v179_v29 }
 0x1bf   :  { %181 = vadd.xlane.f32.xlu0 %v180_v30 }
 0x24c   :  { %v182_v49 = vpop.xlane.xlu0 %181 }
 0x24d   :  { %v183_v50 = vmul.f32 0.03125, %v182_v49 }
 0x24f   :  { %v184_v51 = vadd.f32 1e-05, %v183_v50 }
 0x251   :  { %443 = vrsqrt.f32 %v184_v51 }
 0x25b   :  { %v444_v52 = vpop.eup %443 }
 0x25c   :  { %v186_v54 = vmul.f32 %v444_v52, %v179_v29 }
 0x25e   :  { %v187_v56 = vmul.f32 %v186_v54, %v167_v53 }
 0x260   :  { %v188_v57 = vadd.f32 %v187_v56, %v168_v55 }
 0x262   :  { %v189_v58 = vmax.f32 %v188_v57, 0.0 }
 0x264   :  { %401 = vmatmul.mubr.f32.vlgmr.msra.gmra.mrb[0].mxu1 %v189_v58 }
 0x337   :  { %v272_v60 = vpop.f32.mrb[0].mxu1 }
 0x338   :  { %v273_v61 = vadd.f32 %v272_v60, %v169_v59  ;;  %v402_v62 = vpop.f32.mrb[1].mxu1 }
 0x33a   :  { %276 = vadd.xlane.f32.xlu1 %v273_v61 }
 0x3c7   :  { %v277_v63 = vpop.xlane.xlu1 %276 }
 0x3c8   :  { %v278_v0 = vmul.f32 0.03125, %v277_v63 }
 0x3ca   :  { %v279_v2 = vsub.f32 %v273_v61, %v278_v0 }
 0x3cc   :  { %v280_v3 = vmul.f32 %v279_v2, %v174_v1 }
 0x3ce   :  { %v281_v4 = vmul.f32 %v280_v3, %v280_v3 }
 0x3d0   :  { %282 = vadd.xlane.f32.xlu1 %v281_v4 }
 0x45d   :  { %v283_v5 = vpop.xlane.xlu1 %282 }
 0x45e   :  { %v284_v6 = vmul.f32 0.03125, %v283_v5 }
 0x460   :  { %v285_v7 = vadd.f32 1e-05, %v284_v6 }
 0x462   :  { %445 = vrsqrt.f32 %v285_v7 }
 0x46c   :  { %v446_v10 = vpop.eup %445 }
 0x46d   :  { %v287_v15 = vmul.f32 %v446_v10, %v280_v3 }
 0x46f   :  { %v288_v18 = vmul.f32 %v287_v15, %v170_v12 }
 0x471   :  { %v289_v20 = vadd.f32 %v288_v18, %v171_v16 }
 0x473   :  { %v291_v21 = vadd.f32 %v290_v19, %v289_v20 }
 0x475   :  { %v292_v23 = vmax.f32 %v291_v21, 0.0 }
 0x477   :  { %v293_v24 = vmul.f32 %v292_v23, %v172_v22 }
 0x479   :  { %294 = vadd.xlane.f32.xlu0 %v293_v24 }
 0x506   :  { %v295_v25 = vpop.xlane.xlu0 %294 }
 0x507   :  { %v298_v13 = vadd.f32 %v297_v11, %v295_v25 }
 0x509   :  { %299 = vxpose.xlu1.b32.start.end [1/1] (short) (narrow) %v298_v13, 8 }
 0x589   :  { %v315_v17 = vpop.trf.xlu1 }
 0x58a   :  { %332 = vst.msk [vmem:[#allocation11] sm:$0x1] %vm331_vm2, %v315_v17 }
 0x58b   :  { %546 = shalt.err (!%p543_p8)
}
 0x58c   :  { %s547_s4 = scalar_lea.hbm %s686_s5, 16 }
 0x58d   :  { %p548_p9 = scmp.ne.s32.totalorder %s686_s5, %s547_s4  ;;  %p551_p10 = scmp.lt.u32.totalorder %s547_s4, %s686_s5 }
 0x58f   :  { %p553_p11 = pnand %p551_p10, %p548_p9 }
 0x591   :  { %556 = shalt.err (!%p553_p11)
}
 0x592   :  { %342 = dma.vmem_to_hbm [thread:$0]  %s340_s18, 16, %s686_s5, [#allocation5]  }
 0x593   :  { %563 = dma.done.wait [#allocation5], 16  }
 0x594   :  { %564 = vsyncadd [#allocation5], 4294967280 }
 0x595   :  { %346 = vsyncpa [#allocation4], 1 }
 0x596   :  { %347 = vsyncpa [#allocation7], 1 }
 0x597   :  { %348 = vsyncpa [#allocation10], 1 }
 0x598   :  { %349 = vsyncpa [#allocation5], 1 }

</bundles_post_ra>
